<compile_context>
chip_gen: v7x
topology: tpu7x:2x2x1
jax: 0.10.0
libtpu: 0.0.40
codegen_flags: <defaults>
</compile_context>

<pallas_src>
import jax
import jax.numpy as jnp
from jax.experimental import pallas as pl
from jax.experimental.pallas import tpu as pltpu

LEAKY_SLOPE = 0.01
_VMEM = pl.BlockSpec(memory_space=pltpu.MemorySpace.VMEM)
_VMEM_LIMIT = 48 * 1024 * 1024  # v7x-safe (< 64 MiB physical), above v5e/v6e defaults


def _round_up(x, m):
    return (x + m - 1) // m * m


def _pad2d(a, rows, cols):
    return jnp.pad(a, ((0, rows - a.shape[0]), (0, cols - a.shape[1])))


# ----------------------------- Pallas kernels ------------------------------ #

def _mm_bias_leaky_kernel(w_ref, p_ref, b_ref, o_ref):
    """o = leaky_relu(w @ p + b).  w:[N,K] bf16, p:[K,TM] bf16, b:[N,1] f32."""
    acc = jnp.dot(w_ref[...], p_ref[...], preferred_element_type=jnp.float32)
    acc = acc + b_ref[...]                        # lane-broadcast of the bias
    o_ref[...] = jnp.where(acc >= 0, acc, LEAKY_SLOPE * acc)


def _heads_kernel(w1_ref, p1_ref, w2_ref, p2_ref, o1_ref, o2_ref):
    """Fused conv1 (3x3) and conv2 (ksz x ksz) heads: two bias-free matmuls."""
    o1_ref[...] = jnp.dot(w1_ref[...], p1_ref[...], preferred_element_type=jnp.float32)
    o2_ref[...] = jnp.dot(w2_ref[...], p2_ref[...], preferred_element_type=jnp.float32)


# ------------------------------ conv via im2col ----------------------------- #

def _im2col(x, KH, KW, stride, padding):
    """NCHW -> (K, M) patch matrix.  K ordered (Cin, KH, KW) to match
    torch's weight.view(Cout, -1); M ordered (B, OH, OW)."""
    B, C, H, W = x.shape
    xp = jnp.pad(x, ((0, 0), (0, 0), (padding, padding), (padding, padding)))
    OH = (H + 2 * padding - KH) // stride + 1
    OW = (W + 2 * padding - KW) // stride + 1
    cols = []
    for kh in range(KH):
        for kw in range(KW):
            cols.append(
                xp[:, :, kh:kh + OH * stride:stride, kw:kw + OW * stride:stride]
            )  # (B, C, OH, OW)
    pat = jnp.stack(cols, axis=2)            # (B, C, KH*KW, OH, OW)
    pat = pat.transpose(1, 2, 0, 3, 4)       # (C, KH*KW, B, OH, OW)
    return pat.reshape(C * KH * KW, B * OH * OW), OH, OW


def conv2d_leaky(x, w, b, stride, padding):
    """Conv2d(k, stride, padding) + LeakyReLU(0.01), NCHW, torch semantics."""
    B, C, H, W = x.shape
    Cout, Cin, KH, KW = w.shape
    assert Cin == C
    pat, OH, OW = _im2col(x, KH, KW, stride, padding)
    K, M = pat.shape
    wm = w.reshape(Cout, K)

    # Padded, lane-dense layout: M (multiple of 128) on lanes, Cout on sublanes.
    TM = 512 if M >= 512 else _round_up(M, 128)
    Mp = _round_up(M, TM)
    Kp = _round_up(K, 128)
    Np = _round_up(Cout, 8)

    pat_p = _pad2d(pat, Kp, Mp).astype(jnp.bfloat16)
    wm_p = _pad2d(wm, Np, Kp).astype(jnp.bfloat16)
    b_p = jnp.pad(b, (0, Np - Cout)).reshape(Np, 1).astype(jnp.float32)

    out = pl.pallas_call(
        _mm_bias_leaky_kernel,
        out_shape=jax.ShapeDtypeStruct((Np, Mp), jnp.float32),
        grid_spec=pltpu.PrefetchScalarGridSpec(
            num_scalar_prefetch=0,
            grid=(Mp // TM,),
            in_specs=[
                pl.BlockSpec((Np, Kp), lambda m: (0, 0)),   # weights: replicated
                pl.BlockSpec((Kp, TM), lambda m: (0, m)),   # patches: tiled over M
                pl.BlockSpec((Np, 1), lambda m: (0, 0)),    # bias:    replicated
            ],
            out_specs=pl.BlockSpec((Np, TM), lambda m: (0, m)),
        ),
        compiler_params=pltpu.CompilerParams(
            dimension_semantics=("parallel",),
            vmem_limit_bytes=_VMEM_LIMIT),
        cost_estimate=pl.CostEstimate(
            flops=2 * Np * Kp * Mp,
            transcendentals=0,
            bytes_accessed=2 * (Np * Kp + Kp * Mp) + 4 * (Np + Np * Mp)),
    )(wm_p, pat_p, b_p)

    out = out[:Cout, :M]                                      # (Cout, B*OH*OW)
    return out.reshape(Cout, B, OH, OW).transpose(1, 0, 2, 3)  # NCHW


def discriminator_heads(h, w_conv1, w_conv2):
    """Fused conv1 (3x3, pad 1, no bias) and conv2 (ksz x ksz, no bias) on h."""
    B, C, H, W = h.shape
    c_dim = w_conv2.shape[0]

    p1, OH1, OW1 = _im2col(h, 3, 3, 1, 1)        # (C*9,   B*OH1*OW1)
    p2, _, _ = _im2col(h, H, W, 1, 0)            # (C*H*W, B)

    K1, M1 = p1.shape
    K2, M2 = p2.shape
    K1p, M1p = _round_up(K1, 128), _round_up(M1, 128)
    K2p, M2p = _round_up(K2, 128), _round_up(M2, 128)
    N1p = 8
    N2p = _round_up(c_dim, 8)

    w1 = _pad2d(w_conv1.reshape(1, K1), N1p, K1p).astype(jnp.bfloat16)
    w2 = _pad2d(w_conv2.reshape(c_dim, K2), N2p, K2p).astype(jnp.bfloat16)
    p1p = _pad2d(p1, K1p, M1p).astype(jnp.bfloat16)
    p2p = _pad2d(p2, K2p, M2p).astype(jnp.bfloat16)

    o1, o2 = pl.pallas_call(
        _heads_kernel,
        out_shape=(jax.ShapeDtypeStruct((N1p, M1p), jnp.float32),
                   jax.ShapeDtypeStruct((N2p, M2p), jnp.float32)),
        in_specs=[_VMEM, _VMEM, _VMEM, _VMEM],
        out_specs=(_VMEM, _VMEM),
        compiler_params=pltpu.CompilerParams(vmem_limit_bytes=_VMEM_LIMIT),
        cost_estimate=pl.CostEstimate(
            flops=2 * (N1p * K1p * M1p + N2p * K2p * M2p),
            transcendentals=0,
            bytes_accessed=2 * (N1p * K1p + K1p * M1p + N2p * K2p + K2p * M2p)
                           + 4 * (N1p * M1p + N2p * M2p)),
    )(w1, p1p, w2, p2p)

    src = o1[:1, :M1].reshape(1, B, OH1, OW1).transpose(1, 0, 2, 3)  # (B,1,OH1,OW1)
    cls = o2[:c_dim, :B].T                                           # (B, c_dim)
    return src, cls


def adaptive_avg_pool2d(x, out_hw):
    """torch.nn.AdaptiveAvgPool2d semantics; tiny spatial sizes → plain-JAX glue."""
    B, C, H, W = x.shape
    OH, OW = out_hw
    rows = []
    for i in range(OH):
        h0 = (i * H) // OH
        h1 = -(-((i + 1) * H) // OH)
        cols = []
        for j in range(OW):
            w0 = (j * W) // OW
            w1 = -(-((j + 1) * W) // OW)
            cols.append(jnp.mean(x[:, :, h0:h1, w0:w1], axis=(2, 3)))
        rows.append(jnp.stack(cols, axis=-1))
    return jnp.stack(rows, axis=-2)  # (B, C, OH, OW)


# --------------------------- module: params + forward ----------------------- #

def init_params(key, image_size=16, conv_dim=8, repeat_num=3, c_dim=4):
    """Deterministic synthetic weights with the same shapes as the torch module."""
    keys = jax.random.split(key, repeat_num + 2)
    dims = [3] + [conv_dim * (2 ** i) for i in range(repeat_num)]
    main = []
    for i in range(repeat_num):
        wk, bk = jax.random.split(keys[i])
        cin, cout = dims[i], dims[i + 1]
        w = 0.05 * jax.random.normal(wk, (cout, cin, 4, 4), jnp.float32)
        b = 0.05 * jax.random.normal(bk, (cout,), jnp.float32)
        main.append((w, b))
    curr_dim = dims[-1]
    ksz = image_size // (2 ** repeat_num)
    w_conv1 = 0.05 * jax.random.normal(keys[repeat_num], (1, curr_dim, 3, 3), jnp.float32)
    w_conv2 = 0.05 * jax.random.normal(keys[repeat_num + 1], (c_dim, curr_dim, ksz, ksz), jnp.float32)
    return main, w_conv1, w_conv2


def multi_task_discriminator(x, params):
    main, w_conv1, w_conv2 = params
    h = x
    # self.main: repeated Conv2d(k=4, s=2, p=1) + LeakyReLU(0.01)
    for (w, b) in main:
        h = conv2d_leaky(h, w, b, stride=2, padding=1)
    # self.conv1 (conv part) and self.conv2 fused into one pallas_call.
    src, out_cls = discriminator_heads(h, w_conv1, w_conv2)
    # self.conv1: AdaptiveAvgPool2d([4,4]) tail.
    out_src = adaptive_avg_pool2d(src, (4, 4))
    return out_src, out_cls


# ----------------------------------- main ----------------------------------- #

if __name__ == "__main__":
    # Small, consistent hyper-params: image_size=16, conv_dim=8, repeat_num=3, c_dim=4
    # → h: (B, 32, 2, 2), out_src: (B, 1, 4, 4), out_cls: (B, 4)
    key = jax.random.PRNGKey(0)
    pkey, xkey = jax.random.split(key)
    params = init_params(pkey, image_size=16, conv_dim=8, repeat_num=3, c_dim=4)
    x = jax.random.normal(xkey, (2, 3, 16, 16), jnp.float32)

    fwd = jax.jit(multi_task_discriminator)
    out_src, out_cls = fwd(x, params)
    jax.block_until_ready((out_src, out_cls))

    assert out_src.shape == (2, 1, 4, 4), out_src.shape
    assert out_cls.shape == (2, 4), out_cls.shape
    print("KERNEL_OK")
</pallas_src>

<mosaic_0001>
module attributes {stable_mosaic.version = 11 : i64} {
  func.func @_mm_bias_leaky_kernel(%arg0: i32, %arg1: memref<8x128xbf16, #tpu.memory_space<vmem>>, %arg2: memref<128x128xbf16, #tpu.memory_space<vmem>>, %arg3: memref<8x1xf32, #tpu.memory_space<vmem>>, %arg4: memref<8x128xf32, #tpu.memory_space<vmem>>) attributes {dimension_semantics = [#tpu.dimension_semantics<parallel>], iteration_bounds = array<i64: 1>, scalar_prefetch = 0 : i64, scratch_operands = 0 : i64, tpu.core_type = #tpu.core_type<tc>, window_params = [{pipeline_mode = #tpu.pipeline_mode<synchronous>, transform_indices = @transform_0, window_bounds = array<i64: 8, 128>}, {transform_indices = @transform_1, window_bounds = array<i64: 128, 128>}, {pipeline_mode = #tpu.pipeline_mode<synchronous>, transform_indices = @transform_2, window_bounds = array<i64: 8, 1>}, {transform_indices = @transform_3, window_bounds = array<i64: 8, 128>}]} {
    %c0 = arith.constant 0 : index
    %c0_0 = arith.constant 0 : index
    %0 = vector.load %arg1[%c0, %c0_0] : memref<8x128xbf16, #tpu.memory_space<vmem>>, vector<8x128xbf16>
    %c0_1 = arith.constant 0 : index
    %c0_2 = arith.constant 0 : index
    %1 = vector.load %arg2[%c0_1, %c0_2] : memref<128x128xbf16, #tpu.memory_space<vmem>>, vector<128x128xbf16>
    %cst = arith.constant dense<0.000000e+00> : vector<8x128xf32>
    %2 = tpu.matmul %0, %1, %cst {dimension_numbers = #tpu.dot_dimension_numbers<[1], [0], [0], [1], [0, 0, 1, 1], [], []>} : vector<8x128xbf16>, vector<128x128xbf16>, vector<8x128xf32> -> vector<8x128xf32>
    %c0_3 = arith.constant 0 : index
    %c0_4 = arith.constant 0 : index
    %3 = vector.load %arg3[%c0_3, %c0_4] : memref<8x1xf32, #tpu.memory_space<vmem>>, vector<8x1xf32>
    %4 = vector.broadcast %3 : vector<8x1xf32> to vector<8x128xf32>
    %5 = arith.addf %2, %4 : vector<8x128xf32>
    %cst_5 = arith.constant 0.000000e+00 : f32
    %6 = vector.broadcast %cst_5 : f32 to vector<8x128xf32>
    %7 = arith.cmpf oge, %5, %6 : vector<8x128xf32>
    %cst_6 = arith.constant 0.00999999977 : f32
    %8 = vector.broadcast %cst_6 : f32 to vector<8x128xf32>
    %9 = arith.mulf %8, %5 : vector<8x128xf32>
    %10 = arith.select %7, %5, %9 : vector<8x128xi1>, vector<8x128xf32>
    %c0_7 = arith.constant 0 : index
    %c0_8 = arith.constant 0 : index
    %11 = vector.load %arg4[%c0_7, %c0_8] : memref<8x128xf32, #tpu.memory_space<vmem>>, vector<8x128xf32>
    tpu.vector_store %arg4[%c0_7, %c0_8], %10 {strides = array<i32>} : memref<8x128xf32, #tpu.memory_space<vmem>>, vector<8x128xf32>,
    return
  }
  func.func @transform_0(%arg0: i32) -> (i32, i32) {
    %c0_i32 = arith.constant 0 : i32
    %c0_i32_0 = arith.constant 0 : i32
    %c0_i32_1 = arith.constant 0 : i32
    return %c0_i32, %c0_i32_0 : i32, i32
  }
  func.func @transform_1(%arg0: i32) -> (i32, i32) {
    %c0_i32 = arith.constant 0 : i32
    %c0_i32_0 = arith.constant 0 : i32
    return %c0_i32, %arg0 : i32, i32
  }
  func.func @transform_2(%arg0: i32) -> (i32, i32) {
    %c0_i32 = arith.constant 0 : i32
    %c0_i32_0 = arith.constant 0 : i32
    %c0_i32_1 = arith.constant 0 : i32
    return %c0_i32, %c0_i32_0 : i32, i32
  }
  func.func @transform_3(%arg0: i32) -> (i32, i32) {
    %c0_i32 = arith.constant 0 : i32
    %c0_i32_0 = arith.constant 0 : i32
    return %c0_i32, %arg0 : i32, i32
  }
}

module attributes {stable_mosaic.version = 11 : i64} {
  func.func @_mm_bias_leaky_kernel(%arg0: i32, %arg1: memref<16x128xbf16, #tpu.memory_space<vmem>>, %arg2: memref<128x128xbf16, #tpu.memory_space<vmem>>, %arg3: memref<16x1xf32, #tpu.memory_space<vmem>>, %arg4: memref<16x128xf32, #tpu.memory_space<vmem>>) attributes {dimension_semantics = [#tpu.dimension_semantics<parallel>], iteration_bounds = array<i64: 1>, scalar_prefetch = 0 : i64, scratch_operands = 0 : i64, tpu.core_type = #tpu.core_type<tc>, window_params = [{pipeline_mode = #tpu.pipeline_mode<synchronous>, transform_indices = @transform_0, window_bounds = array<i64: 16, 128>}, {transform_indices = @transform_1, window_bounds = array<i64: 128, 128>}, {pipeline_mode = #tpu.pipeline_mode<synchronous>, transform_indices = @transform_2, window_bounds = array<i64: 16, 1>}, {transform_indices = @transform_3, window_bounds = array<i64: 16, 128>}]} {
    %c0 = arith.constant 0 : index
    %c0_0 = arith.constant 0 : index
    %0 = vector.load %arg1[%c0, %c0_0] : memref<16x128xbf16, #tpu.memory_space<vmem>>, vector<16x128xbf16>
    %c0_1 = arith.constant 0 : index
    %c0_2 = arith.constant 0 : index
    %1 = vector.load %arg2[%c0_1, %c0_2] : memref<128x128xbf16, #tpu.memory_space<vmem>>, vector<128x128xbf16>
    %cst = arith.constant dense<0.000000e+00> : vector<16x128xf32>
    %2 = tpu.matmul %0, %1, %cst {dimension_numbers = #tpu.dot_dimension_numbers<[1], [0], [0], [1], [0, 0, 1, 1], [], []>} : vector<16x128xbf16>, vector<128x128xbf16>, vector<16x128xf32> -> vector<16x128xf32>
    %c0_3 = arith.constant 0 : index
    %c0_4 = arith.constant 0 : index
    %3 = vector.load %arg3[%c0_3, %c0_4] : memref<16x1xf32, #tpu.memory_space<vmem>>, vector<16x1xf32>
    %4 = vector.broadcast %3 : vector<16x1xf32> to vector<16x128xf32>
    %5 = arith.addf %2, %4 : vector<16x128xf32>
    %cst_5 = arith.constant 0.000000e+00 : f32
    %6 = vector.broadcast %cst_5 : f32 to vector<16x128xf32>
    %7 = arith.cmpf oge, %5, %6 : vector<16x128xf32>
    %cst_6 = arith.constant 0.00999999977 : f32
    %8 = vector.broadcast %cst_6 : f32 to vector<16x128xf32>
    %9 = arith.mulf %8, %5 : vector<16x128xf32>
    %10 = arith.select %7, %5, %9 : vector<16x128xi1>, vector<16x128xf32>
    %c0_7 = arith.constant 0 : index
    %c0_8 = arith.constant 0 : index
    %11 = vector.load %arg4[%c0_7, %c0_8] : memref<16x128xf32, #tpu.memory_space<vmem>>, vector<16x128xf32>
    tpu.vector_store %arg4[%c0_7, %c0_8], %10 {strides = array<i32>} : memref<16x128xf32, #tpu.memory_space<vmem>>, vector<16x128xf32>,
    return
  }
  func.func @transform_0(%arg0: i32) -> (i32, i32) {
    %c0_i32 = arith.constant 0 : i32
    %c0_i32_0 = arith.constant 0 : i32
    %c0_i32_1 = arith.constant 0 : i32
    return %c0_i32, %c0_i32_0 : i32, i32
  }
  func.func @transform_1(%arg0: i32) -> (i32, i32) {
    %c0_i32 = arith.constant 0 : i32
    %c0_i32_0 = arith.constant 0 : i32
    return %c0_i32, %arg0 : i32, i32
  }
  func.func @transform_2(%arg0: i32) -> (i32, i32) {
    %c0_i32 = arith.constant 0 : i32
    %c0_i32_0 = arith.constant 0 : i32
    %c0_i32_1 = arith.constant 0 : i32
    return %c0_i32, %c0_i32_0 : i32, i32
  }
  func.func @transform_3(%arg0: i32) -> (i32, i32) {
    %c0_i32 = arith.constant 0 : i32
    %c0_i32_0 = arith.constant 0 : i32
    return %c0_i32, %arg0 : i32, i32
  }
}

module attributes {stable_mosaic.version = 11 : i64} {
  func.func @_mm_bias_leaky_kernel(%arg0: i32, %arg1: memref<32x256xbf16, #tpu.memory_space<vmem>>, %arg2: memref<256x128xbf16, #tpu.memory_space<vmem>>, %arg3: memref<32x1xf32, #tpu.memory_space<vmem>>, %arg4: memref<32x128xf32, #tpu.memory_space<vmem>>) attributes {dimension_semantics = [#tpu.dimension_semantics<parallel>], iteration_bounds = array<i64: 1>, scalar_prefetch = 0 : i64, scratch_operands = 0 : i64, tpu.core_type = #tpu.core_type<tc>, window_params = [{pipeline_mode = #tpu.pipeline_mode<synchronous>, transform_indices = @transform_0, window_bounds = array<i64: 32, 256>}, {transform_indices = @transform_1, window_bounds = array<i64: 256, 128>}, {pipeline_mode = #tpu.pipeline_mode<synchronous>, transform_indices = @transform_2, window_bounds = array<i64: 32, 1>}, {transform_indices = @transform_3, window_bounds = array<i64: 32, 128>}]} {
    %c0 = arith.constant 0 : index
    %c0_0 = arith.constant 0 : index
    %0 = vector.load %arg1[%c0, %c0_0] : memref<32x256xbf16, #tpu.memory_space<vmem>>, vector<32x256xbf16>
    %c0_1 = arith.constant 0 : index
    %c0_2 = arith.constant 0 : index
    %1 = vector.load %arg2[%c0_1, %c0_2] : memref<256x128xbf16, #tpu.memory_space<vmem>>, vector<256x128xbf16>
    %cst = arith.constant dense<0.000000e+00> : vector<32x128xf32>
    %2 = tpu.matmul %0, %1, %cst {dimension_numbers = #tpu.dot_dimension_numbers<[1], [0], [0], [1], [0, 0, 1, 1], [], []>} : vector<32x256xbf16>, vector<256x128xbf16>, vector<32x128xf32> -> vector<32x128xf32>
    %c0_3 = arith.constant 0 : index
    %c0_4 = arith.constant 0 : index
    %3 = vector.load %arg3[%c0_3, %c0_4] : memref<32x1xf32, #tpu.memory_space<vmem>>, vector<32x1xf32>
    %4 = vector.broadcast %3 : vector<32x1xf32> to vector<32x128xf32>
    %5 = arith.addf %2, %4 : vector<32x128xf32>
    %cst_5 = arith.constant 0.000000e+00 : f32
    %6 = vector.broadcast %cst_5 : f32 to vector<32x128xf32>
    %7 = arith.cmpf oge, %5, %6 : vector<32x128xf32>
    %cst_6 = arith.constant 0.00999999977 : f32
    %8 = vector.broadcast %cst_6 : f32 to vector<32x128xf32>
    %9 = arith.mulf %8, %5 : vector<32x128xf32>
    %10 = arith.select %7, %5, %9 : vector<32x128xi1>, vector<32x128xf32>
    %c0_7 = arith.constant 0 : index
    %c0_8 = arith.constant 0 : index
    %11 = vector.load %arg4[%c0_7, %c0_8] : memref<32x128xf32, #tpu.memory_space<vmem>>, vector<32x128xf32>
    tpu.vector_store %arg4[%c0_7, %c0_8], %10 {strides = array<i32>} : memref<32x128xf32, #tpu.memory_space<vmem>>, vector<32x128xf32>,
    return
  }
  func.func @transform_0(%arg0: i32) -> (i32, i32) {
    %c0_i32 = arith.constant 0 : i32
    %c0_i32_0 = arith.constant 0 : i32
    %c0_i32_1 = arith.constant 0 : i32
    return %c0_i32, %c0_i32_0 : i32, i32
  }
  func.func @transform_1(%arg0: i32) -> (i32, i32) {
    %c0_i32 = arith.constant 0 : i32
    %c0_i32_0 = arith.constant 0 : i32
    return %c0_i32, %arg0 : i32, i32
  }
  func.func @transform_2(%arg0: i32) -> (i32, i32) {
    %c0_i32 = arith.constant 0 : i32
    %c0_i32_0 = arith.constant 0 : i32
    %c0_i32_1 = arith.constant 0 : i32
    return %c0_i32, %c0_i32_0 : i32, i32
  }
  func.func @transform_3(%arg0: i32) -> (i32, i32) {
    %c0_i32 = arith.constant 0 : i32
    %c0_i32_0 = arith.constant 0 : i32
    return %c0_i32, %arg0 : i32, i32
  }
}

module attributes {stable_mosaic.version = 11 : i64} {
  func.func @_heads_kernel(%arg0: memref<8x384xbf16, #tpu.memory_space<vmem>>, %arg1: memref<384x128xbf16, #tpu.memory_space<vmem>>, %arg2: memref<8x128xbf16, #tpu.memory_space<vmem>>, %arg3: memref<128x128xbf16, #tpu.memory_space<vmem>>, %arg4: memref<8x128xf32, #tpu.memory_space<vmem>>, %arg5: memref<8x128xf32, #tpu.memory_space<vmem>>) attributes {dimension_semantics = [], scalar_prefetch = 0 : i64, scratch_operands = 0 : i64, tpu.core_type = #tpu.core_type<tc>} {
    %c0 = arith.constant 0 : index
    %c0_0 = arith.constant 0 : index
    %0 = vector.load %arg0[%c0, %c0_0] : memref<8x384xbf16, #tpu.memory_space<vmem>>, vector<8x384xbf16>
    %c0_1 = arith.constant 0 : index
    %c0_2 = arith.constant 0 : index
    %1 = vector.load %arg1[%c0_1, %c0_2] : memref<384x128xbf16, #tpu.memory_space<vmem>>, vector<384x128xbf16>
    %cst = arith.constant dense<0.000000e+00> : vector<8x128xf32>
    %2 = tpu.matmul %0, %1, %cst {dimension_numbers = #tpu.dot_dimension_numbers<[1], [0], [0], [1], [0, 0, 1, 1], [], []>} : vector<8x384xbf16>, vector<384x128xbf16>, vector<8x128xf32> -> vector<8x128xf32>
    %c0_3 = arith.constant 0 : index
    %c0_4 = arith.constant 0 : index
    %3 = vector.load %arg4[%c0_3, %c0_4] : memref<8x128xf32, #tpu.memory_space<vmem>>, vector<8x128xf32>
    tpu.vector_store %arg4[%c0_3, %c0_4], %2 {strides = array<i32>} : memref<8x128xf32, #tpu.memory_space<vmem>>, vector<8x128xf32>,
    %c0_5 = arith.constant 0 : index
    %c0_6 = arith.constant 0 : index
    %4 = vector.load %arg2[%c0_5, %c0_6] : memref<8x128xbf16, #tpu.memory_space<vmem>>, vector<8x128xbf16>
    %c0_7 = arith.constant 0 : index
    %c0_8 = arith.constant 0 : index
    %5 = vector.load %arg3[%c0_7, %c0_8] : memref<128x128xbf16, #tpu.memory_space<vmem>>, vector<128x128xbf16>
    %cst_9 = arith.constant dense<0.000000e+00> : vector<8x128xf32>
    %6 = tpu.matmul %4, %5, %cst_9 {dimension_numbers = #tpu.dot_dimension_numbers<[1], [0], [0], [1], [0, 0, 1, 1], [], []>} : vector<8x128xbf16>, vector<128x128xbf16>, vector<8x128xf32> -> vector<8x128xf32>
    %c0_10 = arith.constant 0 : index
    %c0_11 = arith.constant 0 : index
    %7 = vector.load %arg5[%c0_10, %c0_11] : memref<8x128xf32, #tpu.memory_space<vmem>>, vector<8x128xf32>
    tpu.vector_store %arg5[%c0_10, %c0_11], %6 {strides = array<i32>} : memref<8x128xf32, #tpu.memory_space<vmem>>, vector<8x128xf32>,
    return
  }
}

</mosaic_0001>

<bundles_post_ra>
// kernel: multi_task_discriminator.4
= control target key start
LH: loop header
LB: loop body
LE: loop exit
PB: predicated region body
PF: predicated region fallthrough
CT: control target
= control target key end

     0   :  { %v183_v0 = vmov 0.0   ;;  %vm184_vm0 = vmmov 0   ;;  %v185_v2 = vmov 0   ;;  %s239_s1 = inlined_call_operand.vmem [shape: bf16[128,128], index: 1, kind: input, shape index: {}]   ;;  %s240_s2 = inlined_call_operand.vmem [shape: f32[8,1], index: 2, kind: input, shape index: {}]   ;;  %s241_s0 = inlined_call_operand.vmem [shape: bf16[8,128], index: 0, kind: input, shape index: {}]   ;;  %s242_s3 = inlined_call_operand.vmem [shape: f32[8,128], index: 3, kind: output, shape index: {}]  }
   0x1   :  { %151 = vmatprep.subr.bf16.mxu0 %v183_v0  ;;  %v175_v1 = vld [vmem:[%s239_s1] sm:$0xff]   ;;  %167 = vmatprep.mubr.msk.bf16.mxu0 %vm184_vm0, %v183_v0  ;;  %v176_v3 = vld [vmem:[%s239_s1 + $0x8] sm:$0xff]   ;;  %v177_v4 = vld [vmem:[%s239_s1 + $0x10] sm:$0xff]  }
   0x2   :  { %174 = vset.pattern.permute.xlu0 %v185_v2  ;;  %152 = vmatpush3.bf16.msra.mxu0 %v175_v1  ;;  %v32_v5 = vld [vmem:[%s240_s2] sm:$0xff]  ;;  %v178_v6 = vld [vmem:[%s239_s1 + $0x18] sm:$0xff]   ;;  %v180_v8 = vld [vmem:[%s239_s1 + $0x28] sm:$0xff]  }
   0x3   :  { %153 = vmatprep.subr.bf16.mxu0 %v183_v0  ;;  %35 = vperm.xlu0 %174, %v32_v5   ;;  %v179_v7 = vld [vmem:[%s239_s1 + $0x20] sm:$0xff]   ;;  %v181_v9 = vld [vmem:[%s239_s1 + $0x30] sm:$0xff]   ;;  %v182_v10 = vld [vmem:[%s239_s1 + $0x38] sm:$0xff]  }
   0x4   :  { %v15_v11 = vld [vmem:[%s241_s0] sm:$0xf] }
   0x6   :  { %154 = vmatpush3.bf16.msra.mxu0 %v176_v3 }
   0x7   :  { %155 = vmatprep.subr.bf16.mxu0 %v183_v0 }
   0xa   :  { %156 = vmatpush3.bf16.msra.mxu0 %v177_v4 }
   0xb   :  { %157 = vmatprep.subr.bf16.mxu0 %v183_v0 }
   0xe   :  { %158 = vmatpush3.bf16.msra.mxu0 %v178_v6 }
   0xf   :  { %159 = vmatprep.subr.bf16.mxu0 %v183_v0 }
  0x12   :  { %160 = vmatpush3.bf16.msra.mxu0 %v179_v7 }
  0x13   :  { %161 = vmatprep.subr.bf16.mxu0 %v183_v0 }
  0x16   :  { %162 = vmatpush3.bf16.msra.mxu0 %v180_v8 }
  0x17   :  { %163 = vmatprep.subr.bf16.mxu0 %v183_v0 }
  0x1a   :  { %164 = vmatpush3.bf16.msra.mxu0 %v181_v9 }
  0x1b   :  { %165 = vmatprep.subr.bf16.mxu0 %v183_v0 }
  0x1e   :  { %166 = vmatpush3.bf16.msra.mxu0 %v182_v10 }
  0x21   :  { %168 = vmatmul.mubr.bf16.vlgmr.msra.gmra.mrb[0].mxu0 %v15_v11 }
  0x82   :  { %v36_v12 = vpop.permute.xlu0 %35 }
  0xf4   :  { %v120_v13 = vpop.f32.mrb[0].mxu0 }
  0xf5   :  { %v121_v14 = vadd.f32 %v120_v13, %v36_v12  ;;  %v169_v15 = vpop.f32.mrb[1].mxu0 }
  0xf6   :  { %v123_v16 = vpop.f32.mrb[2].mxu0 }
  0xf7   :  { %vm126_vm1 = vcmp.ge.f32.partialorder %v121_v14, 0.0  ;;  %v127_v17 = vmul.f32 0.01, %v121_v14  ;;  %v170_v18 = vpop.f32.mrb[3].mxu0 }
  0xf9   :  { %v128_v19 = vsel %vm126_vm1, %v121_v14, %v127_v17 }
  0xfa   :  { %129 = vst [vmem:[%s242_s3] sm:$0xff] %v128_v19 }

// kernel: multi_task_discriminator.5
= control target key start
LH: loop header
LB: loop body
LE: loop exit
PB: predicated region body
PF: predicated region fallthrough
CT: control target
= control target key end

     0   :  { %v203_v0 = vmov 0.0   ;;  %vm204_vm0 = vmmov 0   ;;  %v205_v2 = vmov 0   ;;  %s265_s1 = inlined_call_operand.vmem [shape: bf16[128,128], index: 1, kind: input, shape index: {}]   ;;  %s266_s2 = inlined_call_operand.vmem [shape: f32[16,1], index: 2, kind: input, shape index: {}]   ;;  %s267_s0 = inlined_call_operand.vmem [shape: bf16[16,128], index: 0, kind: input, shape index: {}]   ;;  %s268_s3 = inlined_call_operand.vmem [shape: f32[16,128], index: 3, kind: output, shape index: {}]  }
   0x1   :  { %170 = vmatprep.subr.bf16.mxu0 %v203_v0  ;;  %v194_v1 = vld [vmem:[%s265_s1] sm:$0xff]   ;;  %186 = vmatprep.mubr.msk.bf16.mxu0 %vm204_vm0, %v203_v0  ;;  %v195_v3 = vld [vmem:[%s265_s1 + $0x8] sm:$0xff]   ;;  %v196_v4 = vld [vmem:[%s265_s1 + $0x10] sm:$0xff]  }
   0x2   :  { %193 = vset.pattern.permute.xlu0 %v205_v2  ;;  %171 = vmatpush3.bf16.msra.mxu0 %v194_v1  ;;  %v33_v5 = vld [vmem:[%s266_s2] sm:$0xff]  ;;  %v197_v6 = vld [vmem:[%s265_s1 + $0x18] sm:$0xff]   ;;  %v34_v7 = vld [vmem:[%s266_s2 + $0x8] sm:$0xff] }
   0x3   :  { %172 = vmatprep.subr.bf16.mxu0 %v203_v0  ;;  %37 = vperm.xlu0 %193, %v33_v5   ;;  %v198_v8 = vld [vmem:[%s265_s1 + $0x20] sm:$0xff]   ;;  %v199_v9 = vld [vmem:[%s265_s1 + $0x28] sm:$0xff]   ;;  %v200_v10 = vld [vmem:[%s265_s1 + $0x30] sm:$0xff]  }
   0x4   :  { %v201_v11 = vld [vmem:[%s265_s1 + $0x38] sm:$0xff]   ;;  %v202_v12 = vld [vmem:[%s267_s0] sm:$0xff]  }
   0x6   :  { %173 = vmatpush3.bf16.msra.mxu0 %v195_v3 }
   0x7   :  { %174 = vmatprep.subr.bf16.mxu0 %v203_v0  ;;  %42 = vperm.xlu0 %193, %v34_v7  }
   0xa   :  { %175 = vmatpush3.bf16.msra.mxu0 %v196_v4 }
   0xb   :  { %176 = vmatprep.subr.bf16.mxu0 %v203_v0 }
   0xe   :  { %177 = vmatpush3.bf16.msra.mxu0 %v197_v6 }
   0xf   :  { %178 = vmatprep.subr.bf16.mxu0 %v203_v0 }
  0x12   :  { %179 = vmatpush3.bf16.msra.mxu0 %v198_v8 }
  0x13   :  { %180 = vmatprep.subr.bf16.mxu0 %v203_v0 }
  0x16   :  { %181 = vmatpush3.bf16.msra.mxu0 %v199_v9 }
  0x17   :  { %182 = vmatprep.subr.bf16.mxu0 %v203_v0 }
  0x1a   :  { %183 = vmatpush3.bf16.msra.mxu0 %v200_v10 }
  0x1b   :  { %184 = vmatprep.subr.bf16.mxu0 %v203_v0 }
  0x1e   :  { %185 = vmatpush3.bf16.msra.mxu0 %v201_v11 }
  0x21   :  { %187 = vmatmul.mubr.bf16.vlgmr.msra.gmra.mrb[0].mxu0 %v202_v12 }
  0x82   :  { %v38_v13 = vpop.permute.xlu0 %37 }
  0x86   :  { %v43_v17 = vpop.permute.xlu0 %42 }
  0xf4   :  { %v133_v14 = vpop.f32.mrb[0].mxu0 }
  0xf5   :  { %v134_v15 = vadd.f32 %v133_v14, %v38_v13  ;;  %v188_v16 = vpop.f32.mrb[1].mxu0 }
  0xf6   :  { %v136_v18 = vpop.f32.mrb[2].mxu0 }
  0xf7   :  { %vm140_vm1 = vcmp.ge.f32.partialorder %v134_v15, 0.0  ;;  %v142_v19 = vmul.f32 0.01, %v134_v15  ;;  %v137_v20 = vadd.f32 %v136_v18, %v43_v17  ;;  %v189_v21 = vpop.f32.mrb[3].mxu0 }
  0xf9   :  { %v144_v22 = vsel %vm140_vm1, %v134_v15, %v142_v19  ;;  %vm141_vm2 = vcmp.ge.f32.partialorder %v137_v20, 0.0  ;;  %v143_v23 = vmul.f32 0.01, %v137_v20 }
  0xfa   :  { %146 = vst [vmem:[%s268_s3] sm:$0xff] %v144_v22 }
  0xfb   :  { %v145_v24 = vsel %vm141_vm2, %v137_v20, %v143_v23 }
  0xfc   :  { %147 = vst [vmem:[%s268_s3 + $0x8] sm:$0xff] %v145_v24 }

// kernel: multi_task_discriminator.6
= control target key start
LH: loop header
LB: loop body
LE: loop exit
PB: predicated region body
PF: predicated region fallthrough
CT: control target
= control target key end

     0   :  { %v349_v1 = vmov 0   ;;  %s454_s1 = inlined_call_operand.vmem [shape: bf16[256,128], index: 1, kind: input, shape index: {}]   ;;  %s455_s0 = inlined_call_operand.vmem [shape: bf16[32,256], index: 0, kind: input, shape index: {}]   ;;  %s456_s2 = inlined_call_operand.vmem [shape: f32[32,1], index: 2, kind: input, shape index: {}]   ;;  %s457_s3 = inlined_call_operand.vmem [shape: f32[32,128], index: 3, kind: output, shape index: {}]  }
   0x1   :  { %v327_v0 = vld [vmem:[%s454_s1 + $0x40] sm:$0xff]   ;;  %326 = vset.pattern.permute.xlu1 %v349_v1  ;;  %325 = vset.pattern.permute.xlu0 %v349_v1  ;;  %v329_v3 = vld [vmem:[%s454_s1 + $0x48] sm:$0xff]   ;;  %v331_v5 = vld [vmem:[%s454_s1 + $0x50] sm:$0xff]  }
   0x2   :  { %v328_v2 = vld [vmem:[%s454_s1] sm:$0xff]   ;;  %280 = vmatprep.subr.bf16.mxu0 %v327_v0  ;;  %308 = vmatprep.subr.bf16.mxu1 %v327_v0  ;;  %v330_v4 = vld [vmem:[%s454_s1 + $0x8] sm:$0xff]   ;;  %v332_v6 = vld [vmem:[%s454_s1 + $0x10] sm:$0xff]  }
   0x3   :  { %281 = vmatpush3.bf16.msra.mxu0 %v328_v2  ;;  %316 = vmatpush3.bf16.msra.mxu1 %v328_v2  ;;  %v333_v7 = vld [vmem:[%s454_s1 + $0x58] sm:$0xff]   ;;  %v335_v9 = vld [vmem:[%s454_s1 + $0x60] sm:$0xff]   ;;  %v337_v11 = vld [vmem:[%s454_s1 + $0x68] sm:$0xff]  }
   0x4   :  { %282 = vmatprep.subr.bf16.mxu0 %v329_v3  ;;  %309 = vmatprep.subr.bf16.mxu1 %v329_v3  ;;  %v334_v8 = vld [vmem:[%s454_s1 + $0x18] sm:$0xff]   ;;  %v336_v10 = vld [vmem:[%s454_s1 + $0x20] sm:$0xff]   ;;  %v338_v14 = vld [vmem:[%s454_s1 + $0x28] sm:$0xff]  }
   0x5   :  { %v345_v12 = vld [vmem:[%s455_s0 + $0x4] ss:$8 sps:$4 sm:$0xff]   ;;  %v348_v13 = vld [vmem:[%s455_s0 + $0x14] ss:$8 sps:$4 sm:$0xff]   ;;  %v343_v23 = vld [vmem:[%s455_s0] ss:$8 sps:$4 sm:$0xff]  }
   0x6   :  { %v53_v15 = vld [vmem:[%s456_s2 + $0x10] sm:$0xff]  ;;  %v51_v16 = vld [vmem:[%s456_s2] sm:$0xff]  ;;  %223 = vmatprep.mubr.bf16.mxu0 %v345_v12  ;;  %231 = vmatprep.mubr.bf16.mxu1 %v348_v13  ;;  %v54_v19 = vld [vmem:[%s456_s2 + $0x18] sm:$0xff] }
   0x7   :  { %283 = vmatpush3.bf16.msra.mxu0 %v330_v4  ;;  %317 = vmatpush3.bf16.msra.mxu1 %v330_v4  ;;  %v339_v17 = vld [vmem:[%s454_s1 + $0x70] sm:$0xff]   ;;  %v52_v20 = vld [vmem:[%s456_s2 + $0x8] sm:$0xff]  ;;  %v341_v21 = vld [vmem:[%s454_s1 + $0x78] sm:$0xff]  }
   0x8   :  { %284 = vmatprep.subr.bf16.mxu0 %v331_v5  ;;  %310 = vmatprep.subr.bf16.mxu1 %v331_v5  ;;  %v340_v18 = vld [vmem:[%s454_s1 + $0x30] sm:$0xff]   ;;  %v342_v22 = vld [vmem:[%s454_s1 + $0x38] sm:$0xff]  }
   0x9   :  { %67 = vperm.xlu1 %326, %v53_v15   ;;  %57 = vperm.xlu0 %325, %v51_v16   ;;  %v346_v24 = vld [vmem:[%s455_s0 + $0x10] ss:$8 sps:$4 sm:$0xff]  }
   0xb   :  { %285 = vmatpush3.bf16.msra.mxu0 %v332_v6  ;;  %318 = vmatpush3.bf16.msra.mxu1 %v332_v6 }
   0xc   :  { %286 = vmatprep.subr.bf16.mxu0 %v333_v7  ;;  %311 = vmatprep.subr.bf16.mxu1 %v333_v7 }
   0xd   :  { %72 = vperm.xlu1 %326, %v54_v19   ;;  %62 = vperm.xlu0 %325, %v52_v20  }
   0xf   :  { %287 = vmatpush3.bf16.msra.mxu0 %v334_v8  ;;  %319 = vmatpush3.bf16.msra.mxu1 %v334_v8 }
  0x10   :  { %288 = vmatprep.subr.bf16.mxu0 %v335_v9  ;;  %312 = vmatprep.subr.bf16.mxu1 %v335_v9 }
  0x13   :  { %289 = vmatpush3.bf16.msra.mxu0 %v336_v10  ;;  %320 = vmatpush3.bf16.msra.mxu1 %v336_v10 }
  0x14   :  { %290 = vmatprep.subr.bf16.mxu0 %v337_v11  ;;  %313 = vmatprep.subr.bf16.mxu1 %v337_v11 }
  0x17   :  { %291 = vmatpush3.bf16.msra.mxu0 %v338_v14  ;;  %321 = vmatpush3.bf16.msra.mxu1 %v338_v14 }
  0x18   :  { %292 = vmatprep.subr.bf16.mxu0 %v339_v17  ;;  %314 = vmatprep.subr.bf16.mxu1 %v339_v17 }
  0x1b   :  { %293 = vmatpush3.bf16.msra.mxu0 %v340_v18  ;;  %322 = vmatpush3.bf16.msra.mxu1 %v340_v18 }
  0x1c   :  { %294 = vmatprep.subr.bf16.mxu0 %v341_v21  ;;  %315 = vmatprep.subr.bf16.mxu1 %v341_v21 }
  0x1f   :  { %295 = vmatpush3.bf16.msra.mxu0 %v342_v22  ;;  %323 = vmatpush3.bf16.msra.mxu1 %v342_v22 }
  0x22   :  { %224 = vmatmul.mubr.bf16.vlgmr.msra.gmra.mrb[0].mxu0 %v343_v23  ;;  %232 = vmatmul.mubr.bf16.vlgmr.msra.gmra.mrb[0].mxu1 %v346_v24 }
  0x88   :  { %v68_v25 = vpop.permute.xlu1 %67  ;;  %v58_v26 = vpop.permute.xlu0 %57 }
  0x8c   :  { %v73_v41 = vpop.permute.xlu1 %72  ;;  %v63_v42 = vpop.permute.xlu0 %62 }
  0xf5   :  { %v296_v27 = vpop.f32.mrb[0].mxu0  ;;  %v302_v28 = vpop.f32.mrb[0].mxu1 }
  0xf6   :  { %v297_v29 = vpop.f32.mrb[1].mxu0  ;;  %v303_v30 = vpop.f32.mrb[1].mxu1 }
  0xf7   :  { %v298_v31 = vadd.f32 %v297_v29, %v296_v27  ;;  %v304_v32 = vadd.f32 %v303_v30, %v302_v28  ;;  %v299_v33 = vpop.f32.mrb[2].mxu0  ;;  %v305_v34 = vpop.f32.mrb[2].mxu1 }
  0xf8   :  { %v300_v35 = vpop.f32.mrb[3].mxu0  ;;  %v306_v36 = vpop.f32.mrb[3].mxu1 }
  0xf9   :  { %v226_v37 = vadd.f32 %v298_v31, %v58_v26  ;;  %v234_v38 = vadd.f32 %v304_v32, %v68_v25  ;;  %v301_v39 = vadd.f32 %v300_v35, %v299_v33  ;;  %v307_v40 = vadd.f32 %v306_v36, %v305_v34 }
  0xfb   :  { %vm240_vm0 = vcmp.ge.f32.partialorder %v226_v37, 0.0  ;;  %v244_v43 = vmul.f32 0.01, %v226_v37  ;;  %vm242_vm1 = vcmp.ge.f32.partialorder %v234_v38, 0.0  ;;  %v246_v44 = vmul.f32 0.01, %v234_v38 }
  0xfc   :  { %v229_v45 = vadd.f32 %v301_v39, %v63_v42  ;;  %v237_v46 = vadd.f32 %v307_v40, %v73_v41 }
  0xfd   :  { %v248_v47 = vsel %vm240_vm0, %v226_v37, %v244_v43  ;;  %v250_v48 = vsel %vm242_vm1, %v234_v38, %v246_v44 }
  0xfe   :  { %252 = vst [vmem:[%s457_s3] sm:$0xff] %v248_v47  ;;  %254 = vst [vmem:[%s457_s3 + $0x10] sm:$0xff] %v250_v48  ;;  %vm241_vm2 = vcmp.ge.f32.partialorder %v229_v45, 0.0  ;;  %v245_v49 = vmul.f32 0.01, %v229_v45  ;;  %vm243_vm3 = vcmp.ge.f32.partialorder %v237_v46, 0.0 }
  0xff   :  { %v247_v50 = vmul.f32 0.01, %v237_v46 }
 0x100   :  { %v249_v51 = vsel %vm241_vm2, %v229_v45, %v245_v49 }
 0x101   :  { %v251_v52 = vsel %vm243_vm3, %v237_v46, %v247_v50  ;;  %253 = vst [vmem:[%s457_s3 + $0x8] sm:$0xff] %v249_v51 }
 0x102   :  { %255 = vst [vmem:[%s457_s3 + $0x18] sm:$0xff] %v251_v52 }

// kernel: multi_task_discriminator.7
= control target key start
LH: loop header
LB: loop body
LE: loop exit
PB: predicated region body
PF: predicated region fallthrough
CT: control target
= control target key end

     0   :  { %v572_v1 = vmov 0.0   ;;  %vm573_vm0 = vmmov 0   ;;  %s735_s1 = inlined_call_operand.vmem [shape: bf16[384,128], index: 1, kind: input, shape index: {}]   ;;  %s736_s0 = inlined_call_operand.vmem [shape: bf16[8,384], index: 0, kind: input, shape index: {}]   ;;  %s737_s3 = inlined_call_operand.vmem [shape: bf16[128,128], index: 3, kind: input, shape index: {}]   ;;  %s738_s2 = inlined_call_operand.vmem [shape: bf16[8,128], index: 2, kind: input, shape index: {}]   ;;  %s739_s4 = inlined_call_operand.vmem [shape: f32[8,128], index: 4, kind: output, shape index: {0}]   ;;  %s740_s5 = inlined_call_operand.vmem [shape: f32[8,128], index: 5, kind: output, shape index: {1}]  }
   0x1   :  { %v537_v0 = vld [vmem:[%s735_s1 + $0x40] sm:$0xff]   ;;  %495 = vmatprep.subr.bf16.mxu1 %v572_v1  ;;  %511 = vmatprep.mubr.msk.bf16.mxu1 %vm573_vm0, %v572_v1  ;;  %v539_v3 = vld [vmem:[%s735_s1 + $0x48] sm:$0xff]   ;;  %v542_v6 = vld [vmem:[%s735_s1 + $0x50] sm:$0xff]  }
   0x2   :  { %v538_v2 = vld [vmem:[%s735_s1] sm:$0xff]   ;;  %455 = vmatprep.subr.bf16.mxu0 %v537_v0  ;;  %v541_v5 = vld [vmem:[%s735_s1 + $0x8] sm:$0xff]   ;;  %v544_v8 = vld [vmem:[%s735_s1 + $0x10] sm:$0xff]  }
   0x3   :  { %456 = vmatpush3.bf16.msra.mxu0 %v538_v2  ;;  %v540_v4 = vld [vmem:[%s735_s1 + $0x80] sm:$0xff]   ;;  %v543_v7 = vld [vmem:[%s735_s1 + $0x88] sm:$0xff]   ;;  %v545_v9 = vld [vmem:[%s735_s1 + $0x58] sm:$0xff]  }
   0x4   :  { %457 = vmatprep.subr.bf16.mxu0 %v539_v3  ;;  %496 = vmatpush3.bf16.msra.mxu1 %v540_v4  ;;  %v546_v10 = vld [vmem:[%s735_s1 + $0x90] sm:$0xff]   ;;  %v547_v11 = vld [vmem:[%s735_s1 + $0x18] sm:$0xff]   ;;  %v548_v12 = vld [vmem:[%s735_s1 + $0x60] sm:$0xff]  }
   0x5   :  { %497 = vmatprep.subr.bf16.mxu1 %v572_v1  ;;  %v549_v13 = vld [vmem:[%s735_s1 + $0x98] sm:$0xff]   ;;  %v550_v14 = vld [vmem:[%s735_s1 + $0x20] sm:$0xff]   ;;  %v551_v15 = vld [vmem:[%s735_s1 + $0x68] sm:$0xff]  }
   0x6   :  { %v552_v16 = vld [vmem:[%s735_s1 + $0xa0] sm:$0xff]   ;;  %v553_v17 = vld [vmem:[%s735_s1 + $0x28] sm:$0xff]   ;;  %v554_v18 = vld [vmem:[%s735_s1 + $0x70] sm:$0xff]  }
   0x7   :  { %458 = vmatpush3.bf16.msra.mxu0 %v541_v5  ;;  %v555_v19 = vld [vmem:[%s735_s1 + $0xa8] sm:$0xff]   ;;  %v556_v20 = vld [vmem:[%s735_s1 + $0x30] sm:$0xff]   ;;  %v20_v21 = vld [vmem:[%s736_s0] sm:$0xff] }
   0x8   :  { %459 = vmatprep.subr.bf16.mxu0 %v542_v6  ;;  %498 = vmatpush3.bf16.msra.mxu1 %v543_v7  ;;  %v557_v22 = vld [vmem:[%s735_s1 + $0x78] sm:$0xff]   ;;  %v421_v23 = vcombine.high %v20_v21, %v20_v21  ;;  %v558_v24 = vld [vmem:[%s735_s1 + $0xb0] sm:$0xff]   ;;  %v420_v27 = vcombine.low %v20_v21, %v20_v21  ;;  %v564_v28 = vld [vmem:[%s737_s3] sm:$0xff]  }
   0x9   :  { %499 = vmatprep.subr.bf16.mxu1 %v572_v1  ;;  %v559_v25 = vld [vmem:[%s735_s1 + $0x38] sm:$0xff]   ;;  %v562_v29 = vld [vmem:[%s736_s0 + $0x8] ss:$0 sps:$4 sm:$0xff]   ;;  %v566_v31 = vld [vmem:[%s737_s3 + $0x10] sm:$0xff]  }
   0xa   :  { %257 = vmatprep.mubr.bf16.mxu0 %v421_v23  ;;  %v563_v26 = vld [vmem:[%s735_s1 + $0xb8] sm:$0xff]   ;;  %v565_v30 = vld [vmem:[%s737_s3 + $0x8] sm:$0xff]   ;;  %v568_v33 = vld [vmem:[%s737_s3 + $0x20] sm:$0xff]  }
   0xb   :  { %460 = vmatpush3.bf16.msra.mxu0 %v544_v8  ;;  %v567_v32 = vld [vmem:[%s737_s3 + $0x18] sm:$0xff]   ;;  %v569_v34 = vld [vmem:[%s737_s3 + $0x28] sm:$0xff]   ;;  %v570_v35 = vld [vmem:[%s737_s3 + $0x30] sm:$0xff]  }
   0xc   :  { %461 = vmatprep.subr.bf16.mxu0 %v545_v9  ;;  %500 = vmatpush3.bf16.msra.mxu1 %v546_v10  ;;  %v571_v36 = vld [vmem:[%s737_s3 + $0x38] sm:$0xff]   ;;  %v306_v37 = vld [vmem:[%s738_s2] sm:$0xf] }
   0xd   :  { %501 = vmatprep.subr.bf16.mxu1 %v572_v1 }
   0xf   :  { %462 = vmatpush3.bf16.msra.mxu0 %v547_v11 }
  0x10   :  { %463 = vmatprep.subr.bf16.mxu0 %v548_v12  ;;  %502 = vmatpush3.bf16.msra.mxu1 %v549_v13 }
  0x11   :  { %503 = vmatprep.subr.bf16.mxu1 %v572_v1 }
  0x13   :  { %464 = vmatpush3.bf16.msra.mxu0 %v550_v14 }
  0x14   :  { %465 = vmatprep.subr.bf16.mxu0 %v551_v15  ;;  %504 = vmatpush3.bf16.msra.mxu1 %v552_v16 }
  0x15   :  { %505 = vmatprep.subr.bf16.mxu1 %v572_v1 }
  0x17   :  { %466 = vmatpush3.bf16.msra.mxu0 %v553_v17 }
  0x18   :  { %467 = vmatprep.subr.bf16.mxu0 %v554_v18  ;;  %506 = vmatpush3.bf16.msra.mxu1 %v555_v19 }
  0x19   :  { %507 = vmatprep.subr.bf16.mxu1 %v572_v1 }
  0x1b   :  { %468 = vmatpush3.bf16.msra.mxu0 %v556_v20 }
  0x1c   :  { %469 = vmatprep.subr.bf16.mxu0 %v557_v22  ;;  %508 = vmatpush3.bf16.msra.mxu1 %v558_v24 }
  0x1d   :  { %509 = vmatprep.subr.bf16.mxu1 %v572_v1 }
  0x1f   :  { %470 = vmatpush3.bf16.msra.mxu0 %v559_v25 }
  0x20   :  { %515 = vmatprep.subr.bf16.mxu0 %v572_v1  ;;  %510 = vmatpush3.bf16.msra.mxu1 %v563_v26 }
  0x22   :  { %258 = vmatmul.mubr.bf16.vlgmr.msra.gmra.mrb[0].mxu0 %v420_v27 }
  0x23   :  { %516 = vmatpush3.bf16.msra.mxu0 %v564_v28  ;;  %531 = vmatprep.mubr.msk.bf16.mxu0 %vm573_vm0, %v572_v1 }
  0x24   :  { %512 = vmatmul.mubr.bf16.vlgmr.msra.gmra.mrb[0].mxu1 %v562_v29  ;;  %517 = vmatprep.subr.bf16.mxu0 %v572_v1 }
  0x27   :  { %518 = vmatpush3.bf16.msra.mxu0 %v565_v30 }
  0x28   :  { %519 = vmatprep.subr.bf16.mxu0 %v572_v1 }
  0x2b   :  { %520 = vmatpush3.bf16.msra.mxu0 %v566_v31 }
  0x2c   :  { %521 = vmatprep.subr.bf16.mxu0 %v572_v1 }
  0x2f   :  { %522 = vmatpush3.bf16.msra.mxu0 %v567_v32 }
  0x30   :  { %523 = vmatprep.subr.bf16.mxu0 %v572_v1 }
  0x33   :  { %524 = vmatpush3.bf16.msra.mxu0 %v568_v33 }
  0x34   :  { %525 = vmatprep.subr.bf16.mxu0 %v572_v1 }
  0x37   :  { %526 = vmatpush3.bf16.msra.mxu0 %v569_v34 }
  0x38   :  { %527 = vmatprep.subr.bf16.mxu0 %v572_v1 }
  0x3b   :  { %528 = vmatpush3.bf16.msra.mxu0 %v570_v35 }
  0x3c   :  { %529 = vmatprep.subr.bf16.mxu0 %v572_v1 }
  0x3f   :  { %530 = vmatpush3.bf16.msra.mxu0 %v571_v36 }
  0x42   :  { %532 = vmatmul.mubr.bf16.vlgmr.msra.gmra.mrb[4].mxu0 %v306_v37 }
  0xf5   :  { %v471_v38 = vpop.f32.mrb[0].mxu0 }
  0xf6   :  { %v472_v39 = vpop.f32.mrb[1].mxu0 }
  0xf7   :  { %v473_v40 = vadd.f32 %v472_v39, %v471_v38  ;;  %v474_v41 = vpop.f32.mrb[2].mxu0  ;;  %v299_v42 = vpop.f32.mrb[0].mxu1 }
  0xf8   :  { %v475_v43 = vpop.f32.mrb[3].mxu0  ;;  %v513_v44 = vpop.f32.mrb[1].mxu1 }
  0xf9   :  { %v300_v45 = vadd.f32 %v473_v40, %v299_v42  ;;  %v302_v46 = vpop.f32.mrb[2].mxu1 }
  0xfa   :  { %v514_v47 = vpop.f32.mrb[3].mxu1 }
  0xfb   :  { %305 = vst [vmem:[%s739_s4] sm:$0xff] %v300_v45 }
 0x115   :  { %v405_v48 = vpop.f32.mrb[4].mxu0 }
 0x116   :  { %411 = vst [vmem:[%s740_s5] sm:$0xff] %v405_v48  ;;  %v533_v49 = vpop.f32.mrb[5].mxu0 }
 0x117   :  { %v408_v50 = vpop.f32.mrb[6].mxu0 }
 0x118   :  { %v534_v51 = vpop.f32.mrb[7].mxu0 }

</bundles_post_ra>
